<compile_context>
chip_gen: v6e
topology: v6e:2x2x1
jax: 0.10.0
libtpu: 0.0.40
codegen_flags: <defaults>
</compile_context>

<pallas_src>
import functools

import jax
import jax.numpy as jnp
from jax.experimental import pallas as pl
from jax.experimental.pallas import tpu as pltpu


def _entropy_kernel(x_ref, o_ref, *, samples_total, k, c, need_mask):
    """Writes this tile's partial sum of sum_c p*logp (over valid samples)."""
    i = pl.program_id(0)
    x = x_ref[...].astype(jnp.float32)            # (TB, L), L = k*c
    tb = x.shape[0]

    # Shift-invariant fused entropy:
    #   sum_c p*logp = (sum_c e*(x-m)) / s - log(s),  e = exp(x-m), s = sum_c e
    m = jnp.max(x, axis=1, keepdims=True)         # (TB, 1) row max
    xm = x - m
    e = jnp.exp(xm)

    if k == 1:
        # One sample per row: plain per-row lane reductions.
        s = jnp.sum(e, axis=1, keepdims=True)              # (TB, 1)
        num = jnp.sum(e * xm, axis=1, keepdims=True)       # (TB, 1)
        ent = num / s - jnp.log(s)                         # (TB, 1) = sum_c p*logp
        if need_mask:
            row = jax.lax.broadcasted_iota(jnp.int32, (tb, 1), 0) + i * tb
            ent = jnp.where(row < samples_total, ent, 0.0)
    else:
        # k samples folded into the lane dim.  Segmented lane sums go through
        # the otherwise-idle MXU: seg[l, j] = 1 iff lane l belongs to sample j.
        # (Comparison-built indicator: no integer division in the kernel.)
        lane = jax.lax.broadcasted_iota(jnp.int32, (k * c, k), 0)
        col = jax.lax.broadcasted_iota(jnp.int32, (k * c, k), 1)
        seg = ((lane >= col * c) & (lane < (col + 1) * c)).astype(jnp.float32)
        s = jnp.dot(e, seg, preferred_element_type=jnp.float32)         # (TB, k)
        num = jnp.dot(e * xm, seg, preferred_element_type=jnp.float32)  # (TB, k)
        ent = num / s - jnp.log(s)                                      # (TB, k)
        if need_mask:
            row = jax.lax.broadcasted_iota(jnp.int32, (tb, k), 0) + i * tb
            colj = jax.lax.broadcasted_iota(jnp.int32, (tb, k), 1)
            sample = row * k + colj
            ent = jnp.where(sample < samples_total, ent, 0.0)

    part = jnp.sum(jnp.sum(ent, axis=1, keepdims=True), axis=0, keepdims=True)  # (1, 1)
    o_ref[...] = part.reshape(1, 1, 1)


def _pick_tile_rows(rows, cols, itemsize, sublane):
    """Row-tile size: big enough to amortize per-step overhead (target multi-MiB
    input tiles), small enough that (2x input tile) + (~4x f32 intermediates)
    stays well inside a v7x TensorCore's 64 MiB VMEM, and >= 2 grid steps
    whenever the batch can split (so both v7x TensorCores get work)."""
    budget = 32 << 20                              # bytes charged against VMEM
    per_row = cols * (2 * itemsize + 4 * 4)        # 2x input + ~4x f32 temps
    tb = max(sublane, budget // max(1, per_row))
    if rows > sublane:                             # can split -> aim for >= 2 tiles
        half = ((rows + 1) // 2 + sublane - 1) // sublane * sublane
        tb = min(tb, half)
    tb = max(sublane, (tb // sublane) * sublane)
    return rows if tb >= rows else tb


def conditional_entropy_loss(x, tile_rows=None, fold_lanes=True):
    """x: (B, C) logits (f32 or bf16).  Returns scalar f32 loss:
       -mean_b( sum_c softmax(x)_bc * log_softmax(x)_bc )."""
    B, C = x.shape
    itemsize = jnp.dtype(x.dtype).itemsize
    sublane = {4: 8, 2: 16, 1: 32}.get(itemsize, 8)

    # Lane folding for small class counts: pack k samples into the 128 lanes.
    k = 128 // C if (fold_lanes and 0 < C <= 64) else 1
    k = max(1, k)
    if k > 1:
        b_pad = pl.cdiv(B, k) * k
        if b_pad != B:
            # One extra XLA copy only when B doesn't divide by k (padded
            # samples are masked out inside the kernel).
            x = jnp.pad(x, ((0, b_pad - B), (0, 0)))
        xw = x.reshape(b_pad // k, k * C)          # row-major: free reshape
    else:
        xw = x
    rows, cols = xw.shape

    if tile_rows is None:
        tb = _pick_tile_rows(rows, cols, itemsize, sublane)
    else:
        tb = int(tile_rows)
        if tb < rows and tb % sublane != 0:
            raise ValueError(f"tile_rows must be a multiple of {sublane} (or >= {rows})")
        tb = min(tb, rows)
    num_tiles = pl.cdiv(rows, tb)
    # Masking is only traced in when there actually are padded rows/samples.
    need_mask = (rows % tb != 0) or (k * rows != B)

    kernel = functools.partial(_entropy_kernel, samples_total=B, k=k, c=C,
                               need_mask=need_mask)

    # VMEM limit from the actual footprint (+ headroom); clamped well under a
    # v7x core's 64 MiB and far under v5e/v6e's 128 MiB.
    in_tile = tb * cols * itemsize
    f32_tile = tb * cols * 4
    vmem_limit = 2 * in_tile + 5 * f32_tile + (2 << 20)
    vmem_limit = int(min(max(vmem_limit, 16 << 20), 60 << 20))

    partials = pl.pallas_call(
        kernel,
        out_shape=jax.ShapeDtypeStruct((num_tiles, 1, 1), jnp.float32),
        grid=(num_tiles,),
        in_specs=[pl.BlockSpec((tb, cols), lambda i: (i, 0))],
        out_specs=pl.BlockSpec((1, 1, 1), lambda i: (i, 0, 0)),
        compiler_params=pltpu.CompilerParams(
            dimension_semantics=("parallel",),
            vmem_limit_bytes=vmem_limit,
        ),
    )(xw)

    # Global batch mean with the true B (padded samples were masked to zero).
    return -jnp.sum(partials) / jnp.float32(B)


def _reference(x):
    # Pure-JAX reference mirroring the PyTorch forward.
    xf = x.astype(jnp.float32)
    logp = jax.nn.log_softmax(xf, axis=1)
    p = jax.nn.softmax(xf, axis=1)
    return -1.0 * jnp.mean(jnp.sum(p * logp, axis=1), axis=0)


if __name__ == "__main__":
    key = jax.random.PRNGKey(0)
    k1, k2, k3, k4 = jax.random.split(key, 4)

    # 1) Small demo (B=8, C=32, f32): lane-folded (k=4), single tile.
    x1 = jax.random.normal(k1, (8, 32), dtype=jnp.float32) * 3.0
    out1 = jax.block_until_ready(conditional_entropy_loss(x1))
    ref1 = jax.block_until_ready(_reference(x1))
    assert jnp.allclose(out1, ref1, atol=1e-5, rtol=1e-5), (out1, ref1)

    # 2) Tiled + masked path: B=202 (padded to 204 for k=4 folding), forced
    #    16-row tiles -> 4 grid steps; ragged last tile + padded samples masked.
    x2 = jax.random.normal(k2, (202, 32), dtype=jnp.float32) * 3.0
    out2 = jax.block_until_ready(conditional_entropy_loss(x2, tile_rows=16))
    ref2 = jax.block_until_ready(_reference(x2))
    assert jnp.allclose(out2, ref2, atol=1e-5, rtol=1e-5), (out2, ref2)

    # 3) Wide class count (C=160 > 64): unfolded k=1 path, auto-picked 2 tiles.
    x3 = jax.random.normal(k3, (64, 160), dtype=jnp.float32) * 2.0
    out3 = jax.block_until_ready(conditional_entropy_loss(x3))
    ref3 = jax.block_until_ready(_reference(x3))
    assert jnp.allclose(out3, ref3, atol=1e-5, rtol=1e-5), (out3, ref3)

    # 4) bf16 input stays bf16 on the wire; kernel upcasts after the load.
    x4 = (jax.random.normal(k4, (48, 32), dtype=jnp.float32) * 3.0).astype(jnp.bfloat16)
    out4 = jax.block_until_ready(conditional_entropy_loss(x4))
    ref4 = jax.block_until_ready(_reference(x4))
    assert jnp.allclose(out4, ref4, atol=1e-4, rtol=1e-4), (out4, ref4)

    print("KERNEL_OK")
</pallas_src>

<mosaic_0001>
module attributes {stable_mosaic.version = 11 : i64} {
  func.func @_entropy_kernel(%arg0: i32, %arg1: memref<2x128xf32, #tpu.memory_space<vmem>>, %arg2: memref<1x1x1xf32, #tpu.memory_space<vmem>>) attributes {dimension_semantics = [#tpu.dimension_semantics<parallel>], iteration_bounds = array<i64: 1>, scalar_prefetch = 0 : i64, scratch_operands = 0 : i64, tpu.core_type = #tpu.core_type<tc>, window_params = [{transform_indices = @transform_0, window_bounds = array<i64: 2, 128>}, {transform_indices = @transform_1, window_bounds = array<i64: 1, 1, 1>}]} {
    %c0 = arith.constant 0 : index
    %c0_0 = arith.constant 0 : index
    %0 = vector.load %arg1[%c0, %c0_0] : memref<2x128xf32, #tpu.memory_space<vmem>>, vector<2x128xf32>
    %cst = arith.constant dense<0xFF800000> : vector<2xf32>
    %1 = vector.multi_reduction <maximumf>, %0, %cst [1] : vector<2x128xf32> to vector<2xf32>
    %2 = vector.shape_cast %1 : vector<2xf32> to vector<2x1xf32>
    %3 = vector.broadcast %2 : vector<2x1xf32> to vector<2x128xf32>
    %4 = arith.subf %0, %3 : vector<2x128xf32>
    %5 = math.exp %4 : vector<2x128xf32>
    %6 = tpu.iota {dimensions = array<i32: 0>} : vector<128x4xi32>
    %7 = tpu.iota {dimensions = array<i32: 1>} : vector<128x4xi32>
    %c32_i32 = arith.constant 32 : i32
    %8 = vector.broadcast %c32_i32 : i32 to vector<128x4xi32>
    %9 = arith.muli %7, %8 : vector<128x4xi32>
    %10 = arith.cmpi sge, %6, %9 : vector<128x4xi32>
    %c1_i32 = arith.constant 1 : i32
    %11 = vector.broadcast %c1_i32 : i32 to vector<128x4xi32>
    %12 = arith.addi %7, %11 : vector<128x4xi32>
    %c32_i32_1 = arith.constant 32 : i32
    %13 = vector.broadcast %c32_i32_1 : i32 to vector<128x4xi32>
    %14 = arith.muli %12, %13 : vector<128x4xi32>
    %15 = arith.cmpi slt, %6, %14 : vector<128x4xi32>
    %16 = arith.andi %10, %15 : vector<128x4xi1>
    %17 = arith.extui %16 : vector<128x4xi1> to vector<128x4xi32>
    %18 = arith.sitofp %17 : vector<128x4xi32> to vector<128x4xf32>
    %cst_2 = arith.constant dense<0.000000e+00> : vector<2x4xf32>
    %19 = tpu.matmul %5, %18, %cst_2 {dimension_numbers = #tpu.dot_dimension_numbers<[1], [0], [0], [1], [0, 0, 1, 1], [], []>} : vector<2x128xf32>, vector<128x4xf32>, vector<2x4xf32> -> vector<2x4xf32>
    %20 = arith.mulf %5, %4 : vector<2x128xf32>
    %cst_3 = arith.constant dense<0.000000e+00> : vector<2x4xf32>
    %21 = tpu.matmul %20, %18, %cst_3 {dimension_numbers = #tpu.dot_dimension_numbers<[1], [0], [0], [1], [0, 0, 1, 1], [], []>} : vector<2x128xf32>, vector<128x4xf32>, vector<2x4xf32> -> vector<2x4xf32>
    %22 = arith.divf %21, %19 : vector<2x4xf32>
    %23 = math.log %19 : vector<2x4xf32>
    %24 = arith.subf %22, %23 : vector<2x4xf32>
    %cst_4 = arith.constant dense<0.000000e+00> : vector<2xf32>
    %25 = vector.multi_reduction <add>, %24, %cst_4 [1] : vector<2x4xf32> to vector<2xf32>
    %26 = vector.shape_cast %25 : vector<2xf32> to vector<2x1xf32>
    %cst_5 = arith.constant dense<0.000000e+00> : vector<1xf32>
    %27 = vector.multi_reduction <add>, %26, %cst_5 [0] : vector<2x1xf32> to vector<1xf32>
    %28 = vector.shape_cast %27 : vector<1xf32> to vector<1x1xf32>
    %29 = vector.shape_cast %28 : vector<1x1xf32> to vector<1x1x1xf32>
    %c0_6 = arith.constant 0 : index
    %c0_7 = arith.constant 0 : index
    %c0_8 = arith.constant 0 : index
    %30 = vector.load %arg2[%c0_6, %c0_7, %c0_8] : memref<1x1x1xf32, #tpu.memory_space<vmem>>, vector<1x1x1xf32>
    tpu.vector_store %arg2[%c0_6, %c0_7, %c0_8], %29 {strides = array<i32>} : memref<1x1x1xf32, #tpu.memory_space<vmem>>, vector<1x1x1xf32>,
    return
  }
  func.func @transform_0(%arg0: i32) -> (i32, i32) {
    %c0_i32 = arith.constant 0 : i32
    %c0_i32_0 = arith.constant 0 : i32
    return %arg0, %c0_i32 : i32, i32
  }
  func.func @transform_1(%arg0: i32) -> (i32, i32, i32) {
    %c0_i32 = arith.constant 0 : i32
    %c0_i32_0 = arith.constant 0 : i32
    %c0_i32_1 = arith.constant 0 : i32
    return %arg0, %c0_i32, %c0_i32_0 : i32, i32, i32
  }
}

</mosaic_0001>

<bundles_post_ra>
// kernel: tpu_custom_call.1
= control target key start
LH: loop header
LB: loop body
LE: loop exit
PB: predicated region body
PF: predicated region fallthrough
CT: control target
= control target key end

     0   :  { %6 = vsyncpa [#allocation3], 0  ;;  %s662_s0 = inlined_call_operand.hbm [shape: f32[2,128], index: 0, kind: input, shape index: {}]   ;;  %s663_s1 = inlined_call_operand.hbm [shape: f32[1,1,1], index: 1, kind: output, shape index: {}]  }
   0x1   :  { %7 = vsyncpa [#allocation4], 0  ;;  %s512_s6 = smov [#allocation2]  }
   0x2   :  { %s14_s7 = sshll.u32 %s512_s6, 4  ;;  %s15_s7 = int_to_ptr.vmem [resolvable:$true] %s14_s7 }
   0x3   :  { %s476_s8 = scalar_lea.vmem %s15_s7, 32  ;;  %p481_p1 = scmp.lt.s32.totalorder %s15_s7, %s15_s7 }
   0x4   :  { %p477_p0 = scmp.ne.s32.totalorder %s15_s7, %s476_s8  ;;  %p482_p2 = scmp.lt.s32.totalorder %s476_s8, %s476_s8 }
   0x6   :  { %p483_p3 = por %p482_p2, %p481_p1 }
   0x8   :  { %p484_p4 = pnand %p483_p3, %p477_p0 }
   0xa   :  { %487 = shalt.err (!%p484_p4)
}
   0xb   :  { %17 = dma.hbm_to_vmem [thread:$0]  %s662_s0, 32, %s15_s7, [#allocation3]  }
   0xc   :  { %508 = dma.done.wait [#allocation3], 32  }
   0xd   :  { %509 = vsyncadd [#allocation3], 4294967264  ;;  %v29_v0 = vlaneseq  ;;  %v513_v1 = vmov 0.0   ;;  %vm22_vm0 = vcmask 1041408   ;;  %v543_v11 = vld [vmem:[#allocation2] sm:$0x3] }
   0xe   :  { %387 = vmatprep.subr.mxu0 %v513_v1  ;;  %422 = vmatprep.subr.mxu1 %v513_v1  ;;  %v23_v13 = vsel %vm22_vm0, %v543_v11, -inf  ;;  %v514_v14 = vmov 1.0   ;;  %s516_s0 = smov [#allocation5]  }
   0xf   :  { %v532_v2 = vshrl.u32 %v29_v0, 7  ;;  %v47_v3 = vand.u32 127, %v29_v0  ;;  %24 = vmax.xlane.f32.xlu0 %v23_v13  ;;  %s296_s11 = sshll.u32 %s516_s0, 4  ;;  %s297_s11 = int_to_ptr.vmem [resolvable:$true] %s296_s11 }
  0x10   :  { %s488_s12 = scalar_lea.vmem %s297_s11, 16  ;;  %s492_s13 = scalar_lea.vmem %s297_s11, 32 }
  0x11   :  { %v45_v4 = vadd.s32 120, %v532_v2  ;;  %v535_v5 = vmul.u32 32, %v47_v3  ;;  %v65_v6 = vadd.s32 1, %v47_v3  ;;  %v44_v7 = vadd.s32 112, %v532_v2  ;;  %p489_p5 = scmp.ne.s32.totalorder %s297_s11, %s488_s12  ;;  %p493_p6 = scmp.lt.s32.totalorder %s297_s11, %s297_s11 }
  0x12   :  { %v43_v8 = vadd.s32 104, %v532_v2  ;;  %v42_v10 = vadd.s32 96, %v532_v2  ;;  %v41_v12 = vadd.s32 88, %v532_v2  ;;  %v40_v15 = vadd.s32 80, %v532_v2  ;;  %p494_p7 = scmp.lt.s32.totalorder %s492_s13, %s488_s12 }
  0x13   :  { %vm64_vm1 = vcmp.ge.s32.totalorder %v45_v4, %v535_v5  ;;  %v540_v9 = vmul.u32 32, %v65_v6  ;;  %vm63_vm2 = vcmp.ge.s32.totalorder %v44_v7, %v535_v5  ;;  %v39_v16 = vadd.s32 72, %v532_v2 }
  0x14   :  { %vm62_vm3 = vcmp.ge.s32.totalorder %v43_v8, %v535_v5  ;;  %vm61_vm9 = vcmp.ge.s32.totalorder %v42_v10, %v535_v5  ;;  %vm60_vm12 = vcmp.ge.s32.totalorder %v41_v12, %v535_v5  ;;  %vm59_vm15 = vcmp.ge.s32.totalorder %v40_v15, %v535_v5  ;;  %p495_p8 = por %p494_p7, %p493_p6 }
  0x15   :  { %vm82_vm4 = vcmp.lt.s32.totalorder %v45_v4, %v540_v9  ;;  %vm81_vm5 = vcmp.lt.s32.totalorder %v44_v7, %v540_v9  ;;  %vm80_vm6 = vcmp.lt.s32.totalorder %v43_v8, %v540_v9  ;;  %vm79_vm10 = vcmp.lt.s32.totalorder %v42_v10, %v540_v9 }
  0x16   :  { %vm98_vm7 = vmand %vm64_vm1, %vm82_vm4  ;;  %vm78_vm13 = vcmp.lt.s32.totalorder %v41_v12, %v540_v9  ;;  %vm77_vm1 = vcmp.lt.s32.totalorder %v40_v15, %v540_v9  ;;  %vm76_vm4 = vcmp.lt.s32.totalorder %v39_v16, %v540_v9  ;;  %v38_v17 = vadd.s32 64, %v532_v2  ;;  %p496_p9 = pnand %p495_p8, %p489_p5 }
  0x17   :  { %388 = vmatpush3.msk.msra.mxu0 %vm98_vm7, %v514_v14  ;;  %vm97_vm8 = vmand %vm63_vm2, %vm81_vm5  ;;  %423 = vmatpush3.msk.msra.mxu1 %vm98_vm7, %v514_v14  ;;  %v37_v18 = vadd.s32 56, %v532_v2  ;;  %v36_v19 = vadd.s32 48, %v532_v2  ;;  %v35_v20 = vadd.s32 40, %v532_v2  ;;  %v34_v21 = vadd.s32 32, %v532_v2 }
  0x18   :  { %389 = vmatprep.subr.mxu0 %v513_v1  ;;  %424 = vmatprep.subr.mxu1 %v513_v1  ;;  %vm96_vm11 = vmand %vm62_vm3, %vm80_vm6  ;;  %vm58_vm3 = vcmp.ge.s32.totalorder %v39_v16, %v535_v5  ;;  %vm57_vm6 = vcmp.ge.s32.totalorder %v38_v17, %v535_v5  ;;  %vm75_vm7 = vcmp.lt.s32.totalorder %v38_v17, %v540_v9  ;;  %v33_v22 = vadd.s32 24, %v532_v2 }
  0x19   :  { %390 = vmatpush3.msk.msra.mxu0 %vm97_vm8, %v514_v14  ;;  %425 = vmatpush3.msk.msra.mxu1 %vm97_vm8, %v514_v14  ;;  %vm95_vm14 = vmand %vm61_vm9, %vm79_vm10  ;;  %vm56_vm9 = vcmp.ge.s32.totalorder %v37_v18, %v535_v5  ;;  %vm74_vm10 = vcmp.lt.s32.totalorder %v37_v18, %v540_v9  ;;  %v32_v23 = vadd.s32 16, %v532_v2  ;;  %v31_v24 = vadd.s32 8, %v532_v2 }
  0x1a   :  { %391 = vmatprep.subr.mxu0 %v513_v1  ;;  %426 = vmatprep.subr.mxu1 %v513_v1  ;;  %vm94_vm2 = vmand %vm60_vm12, %vm78_vm13  ;;  %vm55_vm12 = vcmp.ge.s32.totalorder %v36_v19, %v535_v5  ;;  %vm73_vm13 = vcmp.lt.s32.totalorder %v36_v19, %v540_v9 }
  0x1b   :  { %392 = vmatpush3.msk.msra.mxu0 %vm96_vm11, %v514_v14  ;;  %427 = vmatpush3.msk.msra.mxu1 %vm96_vm11, %v514_v14  ;;  %vm93_vm5 = vmand %vm59_vm15, %vm77_vm1  ;;  %vm54_vm15 = vcmp.ge.s32.totalorder %v35_v20, %v535_v5  ;;  %vm72_vm1 = vcmp.lt.s32.totalorder %v35_v20, %v540_v9 }
  0x1c   :  { %393 = vmatprep.subr.mxu0 %v513_v1  ;;  %428 = vmatprep.subr.mxu1 %v513_v1  ;;  %vm92_vm8 = vmand %vm58_vm3, %vm76_vm4  ;;  %vm53_vm3 = vcmp.ge.s32.totalorder %v34_v21, %v535_v5  ;;  %vm71_vm4 = vcmp.lt.s32.totalorder %v34_v21, %v540_v9 }
  0x1d   :  { %394 = vmatpush3.msk.msra.mxu0 %vm95_vm14, %v514_v14  ;;  %429 = vmatpush3.msk.msra.mxu1 %vm95_vm14, %v514_v14  ;;  %vm91_vm11 = vmand %vm57_vm6, %vm75_vm7  ;;  %vm52_vm6 = vcmp.ge.s32.totalorder %v33_v22, %v535_v5  ;;  %vm70_vm7 = vcmp.lt.s32.totalorder %v33_v22, %v540_v9 }
  0x1e   :  { %395 = vmatprep.subr.mxu0 %v513_v1  ;;  %430 = vmatprep.subr.mxu1 %v513_v1  ;;  %vm90_vm14 = vmand %vm56_vm9, %vm74_vm10  ;;  %vm51_vm9 = vcmp.ge.s32.totalorder %v32_v23, %v535_v5  ;;  %vm69_vm10 = vcmp.lt.s32.totalorder %v32_v23, %v540_v9 }
  0x1f   :  { %396 = vmatpush3.msk.msra.mxu0 %vm94_vm2, %v514_v14  ;;  %431 = vmatpush3.msk.msra.mxu1 %vm94_vm2, %v514_v14  ;;  %vm89_vm2 = vmand %vm55_vm12, %vm73_vm13  ;;  %vm50_vm12 = vcmp.ge.s32.totalorder %v31_v24, %v535_v5  ;;  %vm68_vm13 = vcmp.lt.s32.totalorder %v31_v24, %v540_v9 }
  0x20   :  { %397 = vmatprep.subr.mxu0 %v513_v1  ;;  %432 = vmatprep.subr.mxu1 %v513_v1 }
  0x21   :  { %398 = vmatpush3.msk.msra.mxu0 %vm93_vm5, %v514_v14  ;;  %433 = vmatpush3.msk.msra.mxu1 %vm93_vm5, %v514_v14  ;;  %vm88_vm5 = vmand %vm54_vm15, %vm72_vm1  ;;  %vm49_vm15 = vcmp.ge.s32.totalorder %v532_v2, %v535_v5  ;;  %vm67_vm1 = vcmp.lt.s32.totalorder %v532_v2, %v540_v9 }
  0x22   :  { %399 = vmatprep.subr.mxu0 %v513_v1  ;;  %434 = vmatprep.subr.mxu1 %v513_v1 }
  0x23   :  { %400 = vmatpush3.msk.msra.mxu0 %vm92_vm8, %v514_v14  ;;  %435 = vmatpush3.msk.msra.mxu1 %vm92_vm8, %v514_v14  ;;  %vm87_vm8 = vmand %vm53_vm3, %vm71_vm4  ;;  %vm515_vm4 = vmmov 0  }
  0x24   :  { %401 = vmatprep.subr.mxu0 %v513_v1  ;;  %436 = vmatprep.subr.mxu1 %v513_v1  ;;  %vm83_vm3 = vmand %vm49_vm15, %vm67_vm1 }
  0x25   :  { %402 = vmatpush3.msk.msra.mxu0 %vm91_vm11, %v514_v14  ;;  %437 = vmatpush3.msk.msra.mxu1 %vm91_vm11, %v514_v14  ;;  %vm86_vm11 = vmand %vm52_vm6, %vm70_vm7  ;;  %vm288_vm6 = vcmask 0  }
  0x26   :  { %403 = vmatprep.subr.mxu0 %v513_v1  ;;  %438 = vmatprep.subr.mxu1 %v513_v1 }
  0x27   :  { %404 = vmatpush3.msk.msra.mxu0 %vm90_vm14, %v514_v14  ;;  %439 = vmatpush3.msk.msra.mxu1 %vm90_vm14, %v514_v14  ;;  %vm85_vm14 = vmand %vm51_vm9, %vm69_vm10 }
  0x28   :  { %405 = vmatprep.subr.mxu0 %v513_v1  ;;  %440 = vmatprep.subr.mxu1 %v513_v1 }
  0x29   :  { %406 = vmatpush3.msk.msra.mxu0 %vm89_vm2, %v514_v14  ;;  %441 = vmatpush3.msk.msra.mxu1 %vm89_vm2, %v514_v14  ;;  %vm84_vm2 = vmand %vm50_vm12, %vm68_vm13 }
  0x2a   :  { %407 = vmatprep.subr.mxu0 %v513_v1  ;;  %442 = vmatprep.subr.mxu1 %v513_v1 }
  0x2b   :  { %408 = vmatpush3.msk.msra.mxu0 %vm88_vm5, %v514_v14  ;;  %443 = vmatpush3.msk.msra.mxu1 %vm88_vm5, %v514_v14  ;;  %vm277_vm5 = vcmask 25600  }
  0x2c   :  { %409 = vmatprep.subr.mxu0 %v513_v1  ;;  %444 = vmatprep.subr.mxu1 %v513_v1 }
  0x2d   :  { %410 = vmatpush3.msk.msra.mxu0 %vm87_vm8, %v514_v14  ;;  %445 = vmatpush3.msk.msra.mxu1 %vm87_vm8, %v514_v14 }
  0x2e   :  { %411 = vmatprep.subr.mxu0 %v513_v1  ;;  %446 = vmatprep.subr.mxu1 %v513_v1 }
  0x2f   :  { %412 = vmatpush3.msk.msra.mxu0 %vm86_vm11, %v514_v14  ;;  %447 = vmatpush3.msk.msra.mxu1 %vm86_vm11, %v514_v14 }
  0x30   :  { %413 = vmatprep.subr.mxu0 %v513_v1  ;;  %448 = vmatprep.subr.mxu1 %v513_v1 }
  0x31   :  { %414 = vmatpush3.msk.msra.mxu0 %vm85_vm14, %v514_v14  ;;  %449 = vmatpush3.msk.msra.mxu1 %vm85_vm14, %v514_v14 }
  0x32   :  { %415 = vmatprep.subr.mxu0 %v513_v1  ;;  %450 = vmatprep.subr.mxu1 %v513_v1 }
  0x33   :  { %416 = vmatpush3.msk.msra.mxu0 %vm84_vm2, %v514_v14  ;;  %419 = vmatprep.mubr.msk.f32.mxu0 %vm515_vm4, %v513_v1 }
  0x34   :  { %417 = vmatprep.subr.mxu0 %v513_v1  ;;  %451 = vmatpush3.msk.msra.mxu1 %vm84_vm2, %v514_v14 }
  0x35   :  { %418 = vmatpush3.msk.msra.mxu0 %vm83_vm3, %v514_v14  ;;  %452 = vmatprep.subr.mxu1 %v513_v1 }
  0x36   :  { %453 = vmatpush3.msk.msra.mxu1 %vm83_vm3, %v514_v14  ;;  %454 = vmatprep.mubr.msk.f32.mxu1 %vm515_vm4, %v513_v1 }
  0x98   :  { %v25_v25 = vpop.xlane.xlu0 %24 }
  0x99   :  { %v26_v26 = vsub.f32 %v543_v11, %v25_v25 }
  0x9b   :  { %v27_v27 = vmul.f32 1.442695, %v26_v26 }
  0x9d   :  { %462 = vpow2.f32 %v27_v27 }
  0xaa   :  { %v463_v28 = vpop.eup %462 }
  0xab   :  { %v201_v29 = vmul.f32 %v463_v28, %v26_v26  ;;  %420 = vmatmul.mubr.f32.vlgmr.msra.gmra.mxu0 %v463_v28 }
  0xad   :  { %455 = vmatmul.mubr.f32.vlgmr.msra.gmra.mxu1 %v201_v29 }
 0x16b   :  { %v197_v30 = vpop.f32.mrf.mxu0 }
 0x16c   :  { %464 = vrcp.f32 %v197_v30 }
 0x16d   :  { %466 = vlog2.f32 %v197_v30  ;;  %v421_v31 = vpop.f32.mrf.mxu0  ;;  %v268_v32 = vpop.f32.mrf.mxu1 }
 0x16f   :  { %v456_v33 = vpop.f32.mrf.mxu1 }
 0x179   :  { %v465_v34 = vpop.eup %464 }
 0x17a   :  { %v467_v35 = vpop.eup %466  ;;  %v273_v36 = vmul.f32 %v465_v34, %v268_v32 }
 0x17b   :  { %v275_v37 = vmul.f32 0.6931472, %v467_v35 }
 0x17d   :  { %v276_v38 = vsub.f32 %v273_v36, %v275_v37 }
 0x17f   :  { %v278_v39 = vsel %vm277_vm5, %v276_v38, 0.0 }
 0x180   :  { %279 = vadd.xlane.f32.xlu0 %v278_v39 }
 0x209   :  { %v280_v40 = vpop.xlane.xlu0 %279 }
 0x20a   :  { %v281_v41 = vsel %vm22_vm0, %v280_v40, 0.0 }
 0x20b   :  { %v282_v42 = vrot.slane %v281_v41, 4 }
 0x20d   :  { %v283_v43 = vadd.f32 %v282_v42, %v281_v41 }
 0x20f   :  { %v284_v44 = vrot.slane %v283_v43, 2 }
 0x211   :  { %v285_v45 = vadd.f32 %v284_v44, %v283_v43 }
 0x213   :  { %v286_v46 = vrot.slane %v285_v45, 1 }
 0x215   :  { %v287_v47 = vadd.f32 %v286_v46, %v285_v45 }
 0x217   :  { %289 = vst.msk [vmem:[#allocation5] sm:$0x1] %vm288_vm6, %v287_v47 }
 0x218   :  { %499 = shalt.err (!%p496_p9)
}
 0x219   :  { %299 = dma.vmem_to_hbm [thread:$0]  %s297_s11, 16, %s663_s1, [#allocation4]  }
 0x21a   :  { %510 = dma.done.wait [#allocation4], 16  }
 0x21b   :  { %511 = vsyncadd [#allocation4], 4294967280 }
 0x21c   :  { %303 = vsyncpa [#allocation3], 1 }
 0x21d   :  { %304 = vsyncpa [#allocation4], 1 }

</bundles_post_ra>
